<compile_context>
chip_gen: v5e
topology: v5e:2x2
jax: 0.10.0
libtpu: 0.0.40
codegen_flags: <defaults>
</compile_context>

<pallas_src>
import functools

import jax
import jax.numpy as jnp
from jax.experimental import pallas as pl
from jax.experimental.pallas import tpu as pltpu


def _round_up(x, m):
    return ((x + m - 1) // m) * m


def _choose_tiling(batch, max_tile_b):
    """Pick (padded_b, tile_b, num_tiles).

    - padded_b is bucketed (multiples of 256 rows) so recompiles are coarse.
    - num_tiles is >= 2 and even so ("parallel",) balances v7x's two cores.
    - tile_b is a multiple of 128 (lane width / bf16 sublane packing).
    """
    max_tile_b = max(128, _round_up(max_tile_b, 128))
    padded_b = _round_up(max(batch, 256), 256)
    num_tiles = max(2, pl.cdiv(padded_b, max_tile_b))
    num_tiles = _round_up(num_tiles, 2)
    tile_b = _round_up(pl.cdiv(padded_b, num_tiles), 128)
    padded_b = tile_b * num_tiles
    return padded_b, tile_b, num_tiles


def ncf_mlp_kernel(ue_ref, ie_ref, w1_ref, c_ref, out_ref):
    """One batch tile of the fused NCF MLP.

    ue_ref : [TILE_B, D] bf16 gathered user embeddings
    ie_ref : [TILE_B, D] bf16 gathered item embeddings
    w1_ref : [2*D, 64]   bf16 fc1 weight (transposed); rows [:D] = user half,
                         rows [D:] = item half
    c_ref  : [3, 64]     f32 packed small params: row0 = fc1 bias,
                         row1 = fc2 weight row, row2 = fc2 bias (broadcast)
    out_ref: [TILE_B, 1] f32
    """
    d = ue_ref.shape[1]
    # fc1 over the implicit concat([user, item]) as two K=D MXU pushes into a
    # single f32 accumulator (no [B, 2D] concat anywhere).
    h = jnp.dot(ue_ref[...], w1_ref[:d, :], preferred_element_type=jnp.float32)
    h = h + jnp.dot(ie_ref[...], w1_ref[d:, :],
                    preferred_element_type=jnp.float32)
    h = h + c_ref[0:1, :]            # fc1 bias (sublane broadcast)
    h = jnp.maximum(h, 0.0)          # ReLU, kept in f32 (v5e VPU has no bf16)
    # fc2: [64] -> 1 as a VPU multiply + lane reduction (MXU N=1 is wasteful).
    y = jnp.sum(h * c_ref[1:2, :], axis=-1, keepdims=True) + c_ref[2:3, 0:1]
    out_ref[...] = y


@functools.partial(jax.jit,
                   static_argnames=("tile_b", "padded_b", "num_tiles"))
def _ncf_forward_impl(user_ids, item_ids, user_emb, item_emb, w1_t, consts, *,
                      tile_b, padded_b, num_tiles):
    batch = user_ids.shape[0]
    dim = user_emb.shape[1]
    pad = padded_b - batch

    # Pad the tiny int32 id vectors (not the gathered [B, D] embeddings): the
    # gather then produces padded activations directly, with no extra HBM pass.
    uid = jnp.pad(user_ids, (0, pad))
    iid = jnp.pad(item_ids, (0, pad))
    ue = user_emb[uid]     # [padded_b, D] bf16 (embedding lookup stays in XLA)
    ie = item_emb[iid]     # [padded_b, D] bf16

    # Deeper input buffering only pays off when there are enough grid steps.
    nbuf = 3 if num_tiles >= 3 else 2

    flops = padded_b * (2 * (2 * dim) * 64 + 3 * 64)
    bytes_accessed = padded_b * (2 * dim * 2 + 4)

    out = pl.pallas_call(
        ncf_mlp_kernel,
        out_shape=jax.ShapeDtypeStruct((padded_b, 1), jnp.float32),
        grid=(num_tiles,),
        in_specs=[
            pl.BlockSpec((tile_b, dim), lambda i: (i, 0),
                         pipeline_mode=pl.Buffered(nbuf)),   # user embeds
            pl.BlockSpec((tile_b, dim), lambda i: (i, 0),
                         pipeline_mode=pl.Buffered(nbuf)),   # item embeds
            pl.BlockSpec((2 * dim, 64), lambda i: (0, 0)),   # fc1 weight (both halves)
            pl.BlockSpec((3, 64), lambda i: (0, 0)),         # packed b1/w2/b2
        ],
        out_specs=pl.BlockSpec((tile_b, 1), lambda i: (i, 0)),
        compiler_params=pltpu.CompilerParams(
            dimension_semantics=("parallel",),
            vmem_limit_bytes=48 * 1024 * 1024),
        cost_estimate=pl.CostEstimate(
            flops=flops, transcendentals=0, bytes_accessed=bytes_accessed),
    )(ue, ie, w1_t, consts)

    return out[:batch, 0]


def ncf_forward(user_ids, item_ids, params, max_tile_b=8192):
    """Full NCF forward: embedding lookup (XLA) + fused MLP (Pallas)."""
    batch = user_ids.shape[0]
    padded_b, tile_b, num_tiles = _choose_tiling(batch, max_tile_b)
    out = _ncf_forward_impl(
        user_ids, item_ids,
        params["user_embedding"], params["item_embedding"],
        params["fc1_w_t"], params["consts"],
        tile_b=tile_b, padded_b=padded_b, num_tiles=num_tiles)
    # Matches torch's x.squeeze() (0-d for batch == 1).
    return jnp.squeeze(out)


def ncf_reference(user_ids, item_ids, params):
    """Pure-JAX reference (same bf16 storage, f32 accumulation)."""
    dim = params["user_embedding"].shape[1]
    ue = params["user_embedding"][user_ids]
    ie = params["item_embedding"][item_ids]
    w1 = params["fc1_w_t"]
    c = params["consts"]
    h = (jnp.dot(ue, w1[:dim], preferred_element_type=jnp.float32)
         + jnp.dot(ie, w1[dim:], preferred_element_type=jnp.float32)
         + c[0:1, :])
    h = jnp.maximum(h, 0.0)
    y = jnp.sum(h * c[1:2, :], axis=-1) + c[2, 0]
    return jnp.squeeze(y)


def init_params(key, num_users, num_items, embedding_dim=32):
    k1, k2, k3, k4, k5, k6 = jax.random.split(key, 6)
    in1 = embedding_dim * 2
    # nn.Embedding default init: N(0,1); nn.Linear default: U(+-1/sqrt(fan_in)).
    lim1 = 1.0 / jnp.sqrt(jnp.float32(in1))
    lim2 = 1.0 / jnp.sqrt(jnp.float32(64.0))
    w1_t = jax.random.uniform(k3, (in1, 64), jnp.float32, -lim1, lim1)
    b1 = jax.random.uniform(k4, (64,), jnp.float32, -lim1, lim1)
    w2 = jax.random.uniform(k5, (64,), jnp.float32, -lim2, lim2)
    b2 = jax.random.uniform(k6, (), jnp.float32, -lim2, lim2)
    consts = jnp.stack([b1, w2, jnp.full((64,), b2)], axis=0)  # [3, 64] f32
    return {
        "user_embedding": jax.random.normal(
            k1, (num_users, embedding_dim), jnp.float32).astype(jnp.bfloat16),
        "item_embedding": jax.random.normal(
            k2, (num_items, embedding_dim), jnp.float32).astype(jnp.bfloat16),
        "fc1_w_t": w1_t.astype(jnp.bfloat16),   # [2D, 64] transposed fc1 weight
        "consts": consts,                        # [3, 64] f32 packed b1/w2/b2
    }


if __name__ == "__main__":
    key = jax.random.PRNGKey(0)
    num_users, num_items, embedding_dim = 100, 200, 32

    pkey, ukey, ikey, u2key, i2key = jax.random.split(key, 5)
    params = init_params(pkey, num_users, num_items, embedding_dim)

    # Small demo batch (2 grid steps of 128 rows each).
    batch = 8
    user_ids = jax.random.randint(ukey, (batch,), 0, num_users, dtype=jnp.int32)
    item_ids = jax.random.randint(ikey, (batch,), 0, num_items, dtype=jnp.int32)

    out = ncf_forward(user_ids, item_ids, params)
    jax.block_until_ready(out)
    ref = ncf_reference(user_ids, item_ids, params)
    assert out.shape == (batch,)
    assert jnp.allclose(out, ref, atol=5e-3, rtol=5e-3), (out, ref)

    # Ragged batch exercising the padded-id path, a 4-step grid and Buffered(3).
    batch2 = 333
    u2 = jax.random.randint(u2key, (batch2,), 0, num_users, dtype=jnp.int32)
    i2 = jax.random.randint(i2key, (batch2,), 0, num_items, dtype=jnp.int32)
    out2 = ncf_forward(u2, i2, params, max_tile_b=128)
    jax.block_until_ready(out2)
    ref2 = ncf_reference(u2, i2, params)
    assert out2.shape == (batch2,)
    assert jnp.allclose(out2, ref2, atol=5e-3, rtol=5e-3)

    print("KERNEL_OK")
</pallas_src>

<mosaic_0001>
module attributes {stable_mosaic.version = 11 : i64} {
  func.func @ncf_mlp_kernel(%arg0: i32, %arg1: memref<128x32xbf16, #tpu.memory_space<vmem>>, %arg2: memref<128x32xbf16, #tpu.memory_space<vmem>>, %arg3: memref<64x64xbf16, #tpu.memory_space<vmem>>, %arg4: memref<3x64xf32, #tpu.memory_space<vmem>>, %arg5: memref<128x1xf32, #tpu.memory_space<vmem>>) attributes {dimension_semantics = [#tpu.dimension_semantics<parallel>], iteration_bounds = array<i64: 2>, scalar_prefetch = 0 : i64, scratch_operands = 0 : i64, tpu.core_type = #tpu.core_type<tc>, window_params = [{pipeline_mode = #tpu.pipeline_mode<double_buffered>, transform_indices = @transform_0, window_bounds = array<i64: 128, 32>}, {pipeline_mode = #tpu.pipeline_mode<double_buffered>, transform_indices = @transform_1, window_bounds = array<i64: 128, 32>}, {pipeline_mode = #tpu.pipeline_mode<synchronous>, transform_indices = @transform_2, window_bounds = array<i64: 64, 64>}, {pipeline_mode = #tpu.pipeline_mode<synchronous>, transform_indices = @transform_3, window_bounds = array<i64: 3, 64>}, {transform_indices = @transform_4, window_bounds = array<i64: 128, 1>}]} {
    %c0 = arith.constant 0 : index
    %c0_0 = arith.constant 0 : index
    %0 = vector.load %arg1[%c0, %c0_0] : memref<128x32xbf16, #tpu.memory_space<vmem>>, vector<128x32xbf16>
    %c0_1 = arith.constant 0 : index
    %c0_2 = arith.constant 0 : index
    %1 = vector.load %arg3[%c0_1, %c0_2] : memref<64x64xbf16, #tpu.memory_space<vmem>>, vector<32x64xbf16>
    %cst = arith.constant dense<0.000000e+00> : vector<128x64xf32>
    %2 = tpu.matmul %0, %1, %cst {dimension_numbers = #tpu.dot_dimension_numbers<[1], [0], [0], [1], [0, 0, 1, 1], [], []>} : vector<128x32xbf16>, vector<32x64xbf16>, vector<128x64xf32> -> vector<128x64xf32>
    %c0_3 = arith.constant 0 : index
    %c0_4 = arith.constant 0 : index
    %3 = vector.load %arg2[%c0_3, %c0_4] : memref<128x32xbf16, #tpu.memory_space<vmem>>, vector<128x32xbf16>
    %c32 = arith.constant 32 : index
    %c0_5 = arith.constant 0 : index
    %4 = vector.load %arg3[%c32, %c0_5] : memref<64x64xbf16, #tpu.memory_space<vmem>>, vector<32x64xbf16>
    %cst_6 = arith.constant dense<0.000000e+00> : vector<128x64xf32>
    %5 = tpu.matmul %3, %4, %cst_6 {dimension_numbers = #tpu.dot_dimension_numbers<[1], [0], [0], [1], [0, 0, 1, 1], [], []>} : vector<128x32xbf16>, vector<32x64xbf16>, vector<128x64xf32> -> vector<128x64xf32>
    %6 = arith.addf %2, %5 : vector<128x64xf32>
    %c0_7 = arith.constant 0 : index
    %c0_8 = arith.constant 0 : index
    %7 = vector.load %arg4[%c0_7, %c0_8] : memref<3x64xf32, #tpu.memory_space<vmem>>, vector<1x64xf32>
    %8 = vector.broadcast %7 : vector<1x64xf32> to vector<128x64xf32>
    %9 = arith.addf %6, %8 : vector<128x64xf32>
    %cst_9 = arith.constant 0.000000e+00 : f32
    %10 = vector.broadcast %cst_9 : f32 to vector<128x64xf32>
    %11 = arith.maximumf %9, %10 : vector<128x64xf32>
    %c1 = arith.constant 1 : index
    %c0_10 = arith.constant 0 : index
    %12 = vector.load %arg4[%c1, %c0_10] : memref<3x64xf32, #tpu.memory_space<vmem>>, vector<1x64xf32>
    %13 = vector.broadcast %12 : vector<1x64xf32> to vector<128x64xf32>
    %14 = arith.mulf %11, %13 : vector<128x64xf32>
    %cst_11 = arith.constant dense<0.000000e+00> : vector<128xf32>
    %15 = vector.multi_reduction <add>, %14, %cst_11 [1] : vector<128x64xf32> to vector<128xf32>
    %16 = vector.shape_cast %15 : vector<128xf32> to vector<128x1xf32>
    %c2 = arith.constant 2 : index
    %c0_12 = arith.constant 0 : index
    %17 = vector.load %arg4[%c2, %c0_12] : memref<3x64xf32, #tpu.memory_space<vmem>>, vector<1x1xf32>
    %18 = vector.broadcast %17 : vector<1x1xf32> to vector<128x1xf32>
    %19 = arith.addf %16, %18 : vector<128x1xf32>
    %c0_13 = arith.constant 0 : index
    %c0_14 = arith.constant 0 : index
    %20 = vector.load %arg5[%c0_13, %c0_14] : memref<128x1xf32, #tpu.memory_space<vmem>>, vector<128x1xf32>
    tpu.vector_store %arg5[%c0_13, %c0_14], %19 {strides = array<i32>} : memref<128x1xf32, #tpu.memory_space<vmem>>, vector<128x1xf32>,
    return
  }
  func.func @transform_0(%arg0: i32) -> (i32, i32) {
    %c0_i32 = arith.constant 0 : i32
    %c0_i32_0 = arith.constant 0 : i32
    return %arg0, %c0_i32 : i32, i32
  }
  func.func @transform_1(%arg0: i32) -> (i32, i32) {
    %c0_i32 = arith.constant 0 : i32
    %c0_i32_0 = arith.constant 0 : i32
    return %arg0, %c0_i32 : i32, i32
  }
  func.func @transform_2(%arg0: i32) -> (i32, i32) {
    %c0_i32 = arith.constant 0 : i32
    %c0_i32_0 = arith.constant 0 : i32
    %c0_i32_1 = arith.constant 0 : i32
    return %c0_i32, %c0_i32_0 : i32, i32
  }
  func.func @transform_3(%arg0: i32) -> (i32, i32) {
    %c0_i32 = arith.constant 0 : i32
    %c0_i32_0 = arith.constant 0 : i32
    %c0_i32_1 = arith.constant 0 : i32
    return %c0_i32, %c0_i32_0 : i32, i32
  }
  func.func @transform_4(%arg0: i32) -> (i32, i32) {
    %c0_i32 = arith.constant 0 : i32
    %c0_i32_0 = arith.constant 0 : i32
    return %arg0, %c0_i32 : i32, i32
  }
}

</mosaic_0001>

<bundles_post_ra>
// kernel: _ncf_forward_impl.1
= control target key start
LH: loop header
LB: loop body
LE: loop exit
PB: predicated region body
PF: predicated region fallthrough
CT: control target
= control target key end

     0   :  { %s896_s15 = smov 0   ;;  %s1043_s0 = inlined_call_operand.vmem [shape: bf16[256,32], index: 0, kind: input, shape index: {}]   ;;  %s1044_s1 = inlined_call_operand.vmem [shape: bf16[256,32], index: 1, kind: input, shape index: {}]   ;;  %s1045_s2 = inlined_call_operand.vmem [shape: bf16[64,64], index: 2, kind: input, shape index: {}]   ;;  %s1046_s3 = inlined_call_operand.vmem [shape: f32[3,64], index: 3, kind: input, shape index: {}]   ;;  %s1047_s4 = inlined_call_operand.vmem [shape: f32[256,1], index: 4, kind: output, shape index: {}]  }
   0x1 LB: > { %s719_s16 = sadd.s32 4294967295, %s869_s15   ;;  %p723_p0 = scmp.ge.s32.totalorder %s869_s15, 1  ;;  %s869_s15 = sphi %s896_s15, %s14_s15  }
   0x2   : > { %p174_p1 = scmp.lt.s32.totalorder %s869_s15, 3 }
   0x4   : > { %p175_p2 = pnand %p723_p0, %p174_p1 }
   0x5   : > { %s724_s21 = sshll.u32 (!%p175_p2), %s719_s16, 4 }
   0x6   : > { %178 = sbr.rel (%p175_p2) target bundleno = 338 (0x152), region = 36  ;;  %p206_p3 = scmp.lt.s32.totalorder (!%p175_p2), %s724_s21, 31 }
   0xb   : > { %v847_v0 = vld [vmem:[%s1045_s2 + $0x18] sm:$0xff]  ;;  %v837_v1 = vld [vmem:[%s1045_s2 + $0x8] sm:$0xff]  ;;  %v846_v2 = vld [vmem:[%s1045_s2 + $0x10] sm:$0xff]  ;;  %s1049_s21 = smov (!%p206_p3, %s724_s21), 31  ;;  %vm316_vm0 = vcmask 261120   ;;  %vm567_vm1 = vcmask 523264  }
   0xc   : > { %347 = vmatpush.bf16.msra.mxu0 %v847_v0  ;;  %848 = vmatpush.bf16.msra.mxu2 %v847_v0  ;;  %v836_v3 = vld [vmem:[%s1045_s2] sm:$0xff]  ;;  %s725_s26 = sshll.u32 %s1049_s21, 2  ;;  %s729_s11 = sshll.u32 %s1049_s21, 3  ;;  %vm634_vm2 = vcmask 7168  }
   0xd   : > { %472 = vmatpush.bf16.msra.mxu1 %v837_v1  ;;  %850 = vmatpush.bf16.msra.mxu3 %v837_v1  ;;  %s215_s29 = scalar_lea.vmem %s1044_s1, %s725_s26  ;;  %s209_s6 = scalar_lea.vmem %s1043_s0, %s725_s26  ;;  %v944_v21 = vld [vmem:[%s1046_s3] ss:$0 sm:$0xff]  ;;  %v950_v25 = vld [vmem:[%s1046_s3 + $0x1] ss:$0 sm:$0xff] }
   0xe   : > { %v838_v4 = vld [vmem:[%s215_s29] sm:$0xff]  ;;  %v839_v8 = vld [vmem:[%s215_s29 + $0x8] sm:$0xff]  ;;  %v840_v12 = vld [vmem:[%s215_s29 + $0x10] sm:$0xff]  ;;  %s1006_s17 = scalar_lea.vmem %s1047_s4, %s729_s11 }
   0xf   : > { %v842_v5 = vld [vmem:[%s215_s29 + $0x20] sm:$0xff]  ;;  %v843_v9 = vld [vmem:[%s215_s29 + $0x28] sm:$0xff]  ;;  %v844_v13 = vld [vmem:[%s215_s29 + $0x30] sm:$0xff] }
  0x10   : > { %348 = vmatpush.bf16.msra.mxu0 %v846_v2  ;;  %849 = vmatpush.bf16.msra.mxu2 %v846_v2  ;;  %v828_v6 = vld [vmem:[%s209_s6] sm:$0xff]  ;;  %v829_v10 = vld [vmem:[%s209_s6 + $0x8] sm:$0xff]  ;;  %v830_v14 = vld [vmem:[%s209_s6 + $0x10] sm:$0xff] }
  0x11   : > { %473 = vmatpush.bf16.msra.mxu1 %v836_v3  ;;  %851 = vmatpush.bf16.msra.mxu3 %v836_v3  ;;  %v832_v7 = vld [vmem:[%s209_s6 + $0x20] sm:$0xff]  ;;  %v833_v11 = vld [vmem:[%s209_s6 + $0x28] sm:$0xff]  ;;  %v834_v15 = vld [vmem:[%s209_s6 + $0x30] sm:$0xff] }
  0x12   : > { %v841_v16 = vld [vmem:[%s215_s29 + $0x18] sm:$0xff] }
  0x13   : > { %770 = vmatmul.msk.bf16.vlgmr.msra.gmra.mxu0 %vm316_vm0, %v838_v4  ;;  %774 = vmatmul.msk.bf16.vlgmr.msra.gmra.mxu2 %vm316_vm0, %v842_v5  ;;  %v845_v17 = vld [vmem:[%s215_s29 + $0x38] sm:$0xff] }
  0x14   : > { %818 = vmatmul.msk.bf16.vlgmr.msra.gmra.mxu1 %vm316_vm0, %v828_v6  ;;  %822 = vmatmul.msk.bf16.vlgmr.msra.gmra.mxu3 %vm316_vm0, %v832_v7  ;;  %v831_v18 = vld [vmem:[%s209_s6 + $0x18] sm:$0xff] }
  0x15   : > { %v835_v19 = vld [vmem:[%s209_s6 + $0x38] sm:$0xff] }
  0x23   : > { %771 = vmatmul.msk.bf16.gmra.mxu0 %vm316_vm0, %v839_v8  ;;  %775 = vmatmul.msk.bf16.gmra.mxu2 %vm316_vm0, %v843_v9 }
  0x24   : > { %819 = vmatmul.msk.bf16.gmra.mxu1 %vm316_vm0, %v829_v10  ;;  %823 = vmatmul.msk.bf16.gmra.mxu3 %vm316_vm0, %v833_v11 }
  0x33   : > { %772 = vmatmul.msk.bf16.gmra.mxu0 %vm316_vm0, %v840_v12  ;;  %776 = vmatmul.msk.bf16.gmra.mxu2 %vm316_vm0, %v844_v13 }
  0x34   : > { %820 = vmatmul.msk.bf16.gmra.mxu1 %vm316_vm0, %v830_v14  ;;  %824 = vmatmul.msk.bf16.gmra.mxu3 %vm316_vm0, %v834_v15 }
  0x43   : > { %773 = vmatmul.msk.bf16.gmra.mxu0 %vm316_vm0, %v841_v16  ;;  %777 = vmatmul.msk.bf16.gmra.mxu2 %vm316_vm0, %v845_v17 }
  0x44   : > { %821 = vmatmul.msk.bf16.gmra.mxu1 %vm316_vm0, %v831_v18  ;;  %825 = vmatmul.msk.bf16.gmra.mxu3 %vm316_vm0, %v835_v19 }
  0x90   : > { %v350_v20 = vpop.f32.mrf.mxu0 }
  0x91   : > { %v475_v22 = vpop.f32.mrf.mxu1 }
  0x92   : > { %v476_v23 = vadd.f32 %v475_v22, %v350_v20 }
  0x94   : > { %v517_v24 = vadd.f32 %v944_v21, %v476_v23 }
  0x96   : > { %v533_v26 = vmax.f32 %v517_v24, 0.0  ;;  %v370_v27 = vpop.f32.mrf.mxu2 }
  0x97   : > { %v495_v28 = vpop.f32.mrf.mxu3 }
  0x98   : > { %v496_v29 = vadd.f32 %v495_v28, %v370_v27  ;;  %v352_v30 = vpop.f32.mrf.mxu0  ;;  %v551_v31 = vmul.f32 %v950_v25, %v533_v26 }
  0x99   : > { %v477_v32 = vpop.f32.mrf.mxu1 }
  0x9a   : > { %v525_v33 = vadd.f32 %v944_v21, %v496_v29  ;;  %v478_v34 = vadd.f32 %v477_v32, %v352_v30  ;;  %v568_v35 = vsel %vm567_vm1, %v551_v31, 0.0 }
  0x9b   : > { %569 = vadd.xlane.f32.xlu0 %v568_v35 }
  0x9c   : > { %v541_v36 = vmax.f32 %v525_v33, 0.0  ;;  %v518_v37 = vadd.f32 %v944_v21, %v478_v34 }
  0x9e   : > { %v534_v38 = vmax.f32 %v518_v37, 0.0  ;;  %v372_v39 = vpop.f32.mrf.mxu2  ;;  %v559_v40 = vmul.f32 %v950_v25, %v541_v36 }
  0x9f   : > { %v497_v41 = vpop.f32.mrf.mxu3 }
  0xa0   : > { %v498_v42 = vadd.f32 %v497_v41, %v372_v39  ;;  %v355_v43 = vpop.f32.mrf.mxu0  ;;  %v592_v44 = vsel %vm567_vm1, %v559_v40, 0.0  ;;  %v552_v45 = vmul.f32 %v950_v25, %v534_v38 }
  0xa1   : > { %v480_v46 = vpop.f32.mrf.mxu1  ;;  %593 = vadd.xlane.f32.xlu2 %v592_v44 }
  0xa2   : > { %v526_v47 = vadd.f32 %v944_v21, %v498_v42  ;;  %v481_v48 = vadd.f32 %v480_v46, %v355_v43  ;;  %v571_v49 = vsel %vm567_vm1, %v552_v45, 0.0 }
  0xa3   : > { %572 = vadd.xlane.f32.xlu0 %v571_v49 }
  0xa4   : > { %v542_v50 = vmax.f32 %v526_v47, 0.0  ;;  %v519_v51 = vadd.f32 %v944_v21, %v481_v48 }
  0xa6   : > { %v535_v52 = vmax.f32 %v519_v51, 0.0  ;;  %v375_v53 = vpop.f32.mrf.mxu2  ;;  %v560_v54 = vmul.f32 %v950_v25, %v542_v50 }
  0xa7   : > { %v500_v55 = vpop.f32.mrf.mxu3 }
  0xa8   : > { %v501_v56 = vadd.f32 %v500_v55, %v375_v53  ;;  %v357_v57 = vpop.f32.mrf.mxu0  ;;  %v553_v58 = vmul.f32 %v950_v25, %v535_v52  ;;  %v595_v63 = vsel %vm567_vm1, %v560_v54, 0.0 }
  0xa9   : > { %v482_v59 = vpop.f32.mrf.mxu1 }
  0xaa   : > { %v527_v60 = vadd.f32 %v944_v21, %v501_v56  ;;  %v483_v61 = vadd.f32 %v482_v59, %v357_v57  ;;  %v574_v62 = vsel %vm567_vm1, %v553_v58, 0.0 }
  0xab   : > { %575 = vadd.xlane.f32.xlu1 %v574_v62  ;;  %596 = vadd.xlane.f32.xlu0 %v595_v63 }
  0xac   : > { %v543_v0 = vmax.f32 %v527_v60, 0.0  ;;  %v520_v1 = vadd.f32 %v944_v21, %v483_v61 }
  0xae   : > { %v377_v2 = vpop.f32.mrf.mxu2  ;;  %v561_v3 = vmul.f32 %v950_v25, %v543_v0  ;;  %v536_v9 = vmax.f32 %v520_v1, 0.0 }
  0xaf   : > { %v502_v4 = vpop.f32.mrf.mxu3 }
  0xb0   : > { %v503_v5 = vadd.f32 %v502_v4, %v377_v2  ;;  %v360_v6 = vpop.f32.mrf.mxu0  ;;  %v598_v7 = vsel %vm567_vm1, %v561_v3, 0.0  ;;  %v554_v16 = vmul.f32 %v950_v25, %v536_v9 }
  0xb1   : > { %v485_v8 = vpop.f32.mrf.mxu1 }
  0xb2   : > { %v528_v10 = vadd.f32 %v944_v21, %v503_v5  ;;  %v486_v11 = vadd.f32 %v485_v8, %v360_v6  ;;  %v577_v27 = vsel %vm567_vm1, %v554_v16, 0.0  ;;  %v862_v8 = vld [vmem:[%s1046_s3 + $0x2] ss:$0 sm:$0xff] }
  0xb3   : > { %599 = vadd.xlane.f32.xlu1 %v598_v7 }
  0xb4   : > { %v544_v12 = vmax.f32 %v528_v10, 0.0  ;;  %v521_v13 = vadd.f32 %v944_v21, %v486_v11 }
  0xb6   : > { %v380_v14 = vpop.f32.mrf.mxu2  ;;  %v562_v15 = vmul.f32 %v950_v25, %v544_v12  ;;  %v537_v18 = vmax.f32 %v521_v13, 0.0 }
  0xb7   : > { %v505_v17 = vpop.f32.mrf.mxu3 }
  0xb8   : > { %v506_v19 = vadd.f32 %v505_v17, %v380_v14  ;;  %v362_v20 = vpop.f32.mrf.mxu0  ;;  %v601_v22 = vsel %vm567_vm1, %v562_v15, 0.0  ;;  %v555_v30 = vmul.f32 %v950_v25, %v537_v18 }
  0xb9   : > { %602 = vadd.xlane.f32.xlu2 %v601_v22  ;;  %v487_v23 = vpop.f32.mrf.mxu1 }
  0xba   : > { %v529_v24 = vadd.f32 %v944_v21, %v506_v19  ;;  %v488_v26 = vadd.f32 %v487_v23, %v362_v20  ;;  %v580_v37 = vsel %vm567_vm1, %v555_v30, 0.0 }
  0xbb   : > { %578 = vadd.xlane.f32.xlu1 %v577_v27 }
  0xbc   : > { %v545_v28 = vmax.f32 %v529_v24, 0.0  ;;  %v522_v29 = vadd.f32 %v944_v21, %v488_v26 }
  0xbe   : > { %v382_v31 = vpop.f32.mrf.mxu2  ;;  %v563_v32 = vmul.f32 %v950_v25, %v545_v28  ;;  %v538_v34 = vmax.f32 %v522_v29, 0.0 }
  0xbf   : > { %v507_v33 = vpop.f32.mrf.mxu3 }
  0xc0   : > { %v508_v35 = vadd.f32 %v507_v33, %v382_v31  ;;  %v365_v36 = vpop.f32.mrf.mxu0  ;;  %v604_v38 = vsel %vm567_vm1, %v563_v32, 0.0  ;;  %v556_v44 = vmul.f32 %v950_v25, %v538_v34 }
  0xc1   : > { %v490_v39 = vpop.f32.mrf.mxu1  ;;  %581 = vadd.xlane.f32.xlu2 %v580_v37  ;;  %605 = vadd.xlane.f32.xlu0 %v604_v38 }
  0xc2   : > { %v530_v40 = vadd.f32 %v944_v21, %v508_v35  ;;  %v491_v41 = vadd.f32 %v490_v39, %v365_v36  ;;  %v583_v51 = vsel %vm567_vm1, %v556_v44, 0.0 }
  0xc4   : > { %v546_v42 = vmax.f32 %v530_v40, 0.0  ;;  %v523_v43 = vadd.f32 %v944_v21, %v491_v41 }
  0xc6   : > { %v539_v45 = vmax.f32 %v523_v43, 0.0  ;;  %v385_v46 = vpop.f32.mrf.mxu2  ;;  %v564_v47 = vmul.f32 %v950_v25, %v546_v42 }
  0xc7   : > { %v510_v48 = vpop.f32.mrf.mxu3 }
  0xc8   : > { %v511_v49 = vadd.f32 %v510_v48, %v385_v46  ;;  %v367_v50 = vpop.f32.mrf.mxu0  ;;  %v557_v52 = vmul.f32 %v950_v25, %v539_v45  ;;  %v607_v53 = vsel %vm567_vm1, %v564_v47, 0.0 }
  0xc9   : > { %v492_v54 = vpop.f32.mrf.mxu1  ;;  %584 = vadd.xlane.f32.xlu2 %v583_v51 }
  0xca   : > { %v531_v55 = vadd.f32 %v944_v21, %v511_v49  ;;  %v493_v56 = vadd.f32 %v492_v54, %v367_v50  ;;  %v586_v57 = vsel %vm567_vm1, %v557_v52, 0.0 }
  0xcb   : > { %587 = vadd.xlane.f32.xlu0 %v586_v57 }
  0xcc   : > { %v547_v58 = vmax.f32 %v531_v55, 0.0  ;;  %v524_v59 = vadd.f32 %v944_v21, %v493_v56 }
  0xce   : > { %v540_v60 = vmax.f32 %v524_v59, 0.0  ;;  %v387_v61 = vpop.f32.mrf.mxu2  ;;  %v565_v62 = vmul.f32 %v950_v25, %v547_v58 }
  0xcf   : > { %v512_v63 = vpop.f32.mrf.mxu3 }
  0xd0   : > { %v513_v0 = vadd.f32 %v512_v63, %v387_v61  ;;  %v610_v1 = vsel %vm567_vm1, %v565_v62, 0.0  ;;  %v558_v2 = vmul.f32 %v950_v25, %v540_v60 }
  0xd1   : > { %611 = vadd.xlane.f32.xlu2 %v610_v1 }
  0xd2   : > { %v532_v3 = vadd.f32 %v944_v21, %v513_v0  ;;  %v589_v4 = vsel %vm567_vm1, %v558_v2, 0.0 }
  0xd3   : > { %590 = vadd.xlane.f32.xlu1 %v589_v4 }
  0xd4   : > { %v548_v5 = vmax.f32 %v532_v3, 0.0 }
  0xd6   : > { %v566_v6 = vmul.f32 %v950_v25, %v548_v5 }
  0xd8   : > { %v613_v7 = vsel %vm567_vm1, %v566_v6, 0.0 }
  0xd9   : > { %614 = vadd.xlane.f32.xlu0 %v613_v7 }
  0xdb   : > { %608 = vadd.xlane.f32.xlu1 %v607_v53 }
 0x10e   : > { %v570_v21 = vpop.xlane.xlu0 %569 }
 0x10f   : > { %v618_v25 = vadd.f32 %v862_v8, %v570_v21 }
 0x111   : > { %635 = vst.msk [vmem:[%s1006_s17] sm:$0xff] %vm634_vm2, %v618_v25 }
 0x114   : > { %v594_v9 = vpop.xlane.xlu2 %593 }
 0x115   : > { %v626_v10 = vadd.f32 %v862_v8, %v594_v9 }
 0x116   : > { %v573_v11 = vpop.xlane.xlu0 %572 }
 0x117   : > { %643 = vst.msk [vmem:[%s1006_s17 + $0x40] sm:$0xff] %vm634_vm2, %v626_v10  ;;  %v619_v12 = vadd.f32 %v862_v8, %v573_v11 }
 0x119   : > { %636 = vst.msk [vmem:[%s1006_s17 + $0x8] sm:$0xff] %vm634_vm2, %v619_v12 }
 0x11e   : > { %v576_v13 = vpop.xlane.xlu1 %575  ;;  %v597_v14 = vpop.xlane.xlu0 %596 }
 0x11f   : > { %v620_v15 = vadd.f32 %v862_v8, %v576_v13  ;;  %v627_v16 = vadd.f32 %v862_v8, %v597_v14 }
 0x121   : > { %637 = vst.msk [vmem:[%s1006_s17 + $0x10] sm:$0xff] %vm634_vm2, %v620_v15 }
 0x122   : > { %644 = vst.msk [vmem:[%s1006_s17 + $0x48] sm:$0xff] %vm634_vm2, %v627_v16 }
 0x126   : > { %v600_v17 = vpop.xlane.xlu1 %599 }
 0x127   : > { %v628_v18 = vadd.f32 %v862_v8, %v600_v17 }
 0x129   : > { %645 = vst.msk [vmem:[%s1006_s17 + $0x50] sm:$0xff] %vm634_vm2, %v628_v18 }
 0x12c   : > { %v603_v19 = vpop.xlane.xlu2 %602 }
 0x12d   : > { %v629_v20 = vadd.f32 %v862_v8, %v603_v19 }
 0x12e   : > { %v579_v22 = vpop.xlane.xlu1 %578 }
 0x12f   : > { %646 = vst.msk [vmem:[%s1006_s17 + $0x58] sm:$0xff] %vm634_vm2, %v629_v20  ;;  %v621_v23 = vadd.f32 %v862_v8, %v579_v22 }
 0x131   : > { %638 = vst.msk [vmem:[%s1006_s17 + $0x18] sm:$0xff] %vm634_vm2, %v621_v23 }
 0x134   : > { %v582_v24 = vpop.xlane.xlu2 %581  ;;  %v606_v26 = vpop.xlane.xlu0 %605 }
 0x135   : > { %v622_v27 = vadd.f32 %v862_v8, %v582_v24  ;;  %v630_v28 = vadd.f32 %v862_v8, %v606_v26 }
 0x137   : > { %639 = vst.msk [vmem:[%s1006_s17 + $0x20] sm:$0xff] %vm634_vm2, %v622_v27 }
 0x138   : > { %647 = vst.msk [vmem:[%s1006_s17 + $0x60] sm:$0xff] %vm634_vm2, %v630_v28 }
 0x13c   : > { %v585_v29 = vpop.xlane.xlu2 %584 }
 0x13d   : > { %v623_v30 = vadd.f32 %v862_v8, %v585_v29 }
 0x13e   : > { %v588_v31 = vpop.xlane.xlu0 %587 }
 0x13f   : > { %640 = vst.msk [vmem:[%s1006_s17 + $0x28] sm:$0xff] %vm634_vm2, %v623_v30  ;;  %v624_v32 = vadd.f32 %v862_v8, %v588_v31 }
 0x141   : > { %641 = vst.msk [vmem:[%s1006_s17 + $0x30] sm:$0xff] %vm634_vm2, %v624_v32 }
 0x144   : > { %v612_v33 = vpop.xlane.xlu2 %611 }
 0x145   : > { %v632_v34 = vadd.f32 %v862_v8, %v612_v33 }
 0x146   : > { %v591_v35 = vpop.xlane.xlu1 %590 }
 0x147   : > { %649 = vst.msk [vmem:[%s1006_s17 + $0x70] sm:$0xff] %vm634_vm2, %v632_v34  ;;  %v625_v36 = vadd.f32 %v862_v8, %v591_v35 }
 0x149   : > { %642 = vst.msk [vmem:[%s1006_s17 + $0x38] sm:$0xff] %vm634_vm2, %v625_v36 }
 0x14c   : > { %v615_v37 = vpop.xlane.xlu0 %614 }
 0x14d   : > { %v633_v38 = vadd.f32 %v862_v8, %v615_v37 }
 0x14e   : > { %v609_v39 = vpop.xlane.xlu1 %608 }
 0x14f   : > { %650 = vst.msk [vmem:[%s1006_s17 + $0x78] sm:$0xff] %vm634_vm2, %v633_v38  ;;  %v631_v40 = vadd.f32 %v862_v8, %v609_v39 }
 0x151   : > { %648 = vst.msk [vmem:[%s1006_s17 + $0x68] sm:$0xff] %vm634_vm2, %v631_v40 }
 0x152 PF: > { %s14_s15 = sadd.s32 1, %s869_s15  }
 0x153   : > { %p11_p4 = scmp.ge.s32.totalorder %s14_s15, 4  }
 0x155   :  { %13 = sbr.rel (!%p11_p4) target bundleno = 1 (0x1), region = 69 }

</bundles_post_ra>
